<compile_context>
chip_gen: v6e
topology: v6e:2x2x1
jax: 0.10.0
libtpu: 0.0.40
codegen_flags: <defaults>
</compile_context>

<pallas_src>
import math

import jax
import jax.numpy as jnp
from jax.experimental import pallas as pl
from jax.experimental.pallas import tpu as pltpu


def _max_lastdim_kernel(x_ref, val_ref, idx_ref):
    x = x_ref[...]                                     # (TILE_R, W)
    t, w = x.shape

    # Max over the lane (last) axis.
    vals = jnp.max(x, axis=-1, keepdims=True)          # (TILE_R, 1)

    # First-occurrence argmax.  NaN parity with torch: jnp.max propagates NaN,
    # but `x == NaN` is all-False, so treat NaN positions as hits explicitly
    # -> index of the first NaN in the row.
    lane = jax.lax.broadcasted_iota(jnp.int32, (t, w), 1)
    hit = (x == vals) | jnp.isnan(x)
    idx = jnp.min(jnp.where(hit, lane, jnp.int32(w)), axis=-1, keepdims=True)

    # Relayout the (TILE_R, 1) column results into lane-dense (1, TILE_R) rows:
    # broadcast along lanes to a tile-aligned (TILE_R, 128) slab (free lane
    # broadcast), transpose on the XLU (idle in this DMA-bound kernel), and
    # keep a single sublane row.  Keeps the output vst unmasked / lane-dense.
    def col_to_row(col_32bit):
        full = jnp.broadcast_to(col_32bit, (t, 128))   # (TILE_R, 128)
        return jnp.transpose(full)[0:1, :]             # (1, TILE_R)

    val_ref[...] = col_to_row(vals.astype(jnp.float32)).astype(val_ref.dtype)
    idx_ref[...] = col_to_row(idx)                     # int32


def _pick_tile_r(n_rows, w, itemsize):
    """Row-tile size: multiple of 128 (lane-dense outputs), within VMEM budget."""
    # One input block occupies TILE_R * round_up(W, 128) * itemsize in VMEM
    # (lanes pad to 128); BlockSpec double-buffers it.  ~4 MiB per buffer stays
    # well inside v5e's 16 MiB default scoped VMEM and v7x's 64 MiB physical.
    lane_padded_w = ((w + 127) // 128) * 128
    budget_bytes = 4 * 1024 * 1024
    cap = max(128, (budget_bytes // (lane_padded_w * itemsize)) // 128 * 128)
    tile = min(512, cap)                               # ~512-row tiles ≈ roofline sweet spot
    tile = min(tile, ((n_rows + 127) // 128) * 128)    # don't tile past the data
    return max(128, tile)


def max_lastdim(x):
    """Pallas equivalent of torch.max(x, dim=-1) -> (values, int32 indices)."""
    orig_shape = x.shape
    w = orig_shape[-1]
    lead = orig_shape[:-1]
    n_rows = math.prod(lead) if lead else 1
    itemsize = jnp.dtype(x.dtype).itemsize

    x2d = x.reshape(n_rows, w)
    tile_r = _pick_tile_r(n_rows, w, itemsize)
    num_blocks = pl.cdiv(n_rows, tile_r)
    rows_pad = num_blocks * tile_r
    if rows_pad != n_rows:
        x2d = jnp.pad(x2d, ((0, rows_pad - n_rows), (0, 0)))

    cost = pl.CostEstimate(
        flops=2 * rows_pad * w,
        transcendentals=0,
        bytes_accessed=rows_pad * w * itemsize + rows_pad * itemsize + rows_pad * 4,
    )

    vals_row, idx_row = pl.pallas_call(
        _max_lastdim_kernel,
        out_shape=(
            jax.ShapeDtypeStruct((1, rows_pad), x.dtype),
            jax.ShapeDtypeStruct((1, rows_pad), jnp.int32),
        ),
        grid=(num_blocks,),
        in_specs=[pl.BlockSpec((tile_r, w), lambda i: (i, 0))],
        out_specs=(
            pl.BlockSpec((1, tile_r), lambda i: (0, i)),
            pl.BlockSpec((1, tile_r), lambda i: (0, i)),
        ),
        compiler_params=pltpu.CompilerParams(
            dimension_semantics=("parallel",),   # rows independent -> v7x 2-TC sharding
            vmem_limit_bytes=32 * 1024 * 1024,
        ),
        cost_estimate=cost,
    )(x2d)

    vals = vals_row.reshape(rows_pad)[:n_rows].reshape(lead)
    idx = idx_row.reshape(rows_pad)[:n_rows].reshape(lead)
    return vals, idx


if __name__ == "__main__":
    k0, k1 = jax.random.split(jax.random.PRNGKey(0))

    # Small NCHW input consistent with the module's forward.
    x = jax.random.normal(k0, (2, 4, 16, 16), dtype=jnp.float32)
    vals, idx = max_lastdim(x)
    vals = jax.block_until_ready(vals)
    idx = jax.block_until_ready(idx)

    ref_vals = jnp.max(x, axis=-1)
    ref_idx = jnp.argmax(x, axis=-1).astype(jnp.int32)
    assert vals.shape == (2, 4, 16) and idx.shape == (2, 4, 16)
    assert jnp.allclose(vals, ref_vals)
    assert jnp.array_equal(idx, ref_idx)

    # Second shape exercising the row-padding path (R = 105 -> padded to 128).
    x2 = jax.random.normal(k1, (3, 5, 7, 33), dtype=jnp.float32)
    v2, i2 = max_lastdim(x2)
    v2 = jax.block_until_ready(v2)
    i2 = jax.block_until_ready(i2)
    assert jnp.allclose(v2, jnp.max(x2, axis=-1))
    assert jnp.array_equal(i2, jnp.argmax(x2, axis=-1).astype(jnp.int32))

    print("KERNEL_OK")
</pallas_src>

<mosaic_0001>
module attributes {stable_mosaic.version = 11 : i64} {
  func.func @_max_lastdim_kernel(%arg0: i32, %arg1: memref<128x16xf32, #tpu.memory_space<vmem>>, %arg2: memref<1x128xf32, #tpu.memory_space<vmem>>, %arg3: memref<1x128xi32, #tpu.memory_space<vmem>>) attributes {dimension_semantics = [#tpu.dimension_semantics<parallel>], iteration_bounds = array<i64: 1>, scalar_prefetch = 0 : i64, scratch_operands = 0 : i64, tpu.core_type = #tpu.core_type<tc>, window_params = [{transform_indices = @transform_0, window_bounds = array<i64: 128, 16>}, {transform_indices = @transform_1, window_bounds = array<i64: 1, 128>}, {transform_indices = @transform_2, window_bounds = array<i64: 1, 128>}]} {
    %c0 = arith.constant 0 : index
    %c0_0 = arith.constant 0 : index
    %0 = vector.load %arg1[%c0, %c0_0] : memref<128x16xf32, #tpu.memory_space<vmem>>, vector<128x16xf32>
    %cst = arith.constant dense<0xFF800000> : vector<128xf32>
    %1 = vector.multi_reduction <maximumf>, %0, %cst [1] : vector<128x16xf32> to vector<128xf32>
    %2 = vector.shape_cast %1 : vector<128xf32> to vector<128x1xf32>
    %3 = tpu.iota {dimensions = array<i32: 1>} : vector<128x16xi32>
    %4 = vector.broadcast %2 : vector<128x1xf32> to vector<128x16xf32>
    %5 = arith.cmpf oeq, %0, %4 : vector<128x16xf32>
    %6 = arith.cmpf one, %0, %0 : vector<128x16xf32>
    %7 = arith.ori %5, %6 : vector<128x16xi1>
    %c16_i32 = arith.constant 16 : i32
    %8 = vector.broadcast %c16_i32 : i32 to vector<128x16xi32>
    %9 = arith.select %7, %3, %8 : vector<128x16xi1>, vector<128x16xi32>
    %cst_1 = arith.constant dense<2147483647> : vector<128xi32>
    %10 = vector.multi_reduction <minsi>, %9, %cst_1 [1] : vector<128x16xi32> to vector<128xi32>
    %11 = vector.shape_cast %10 : vector<128xi32> to vector<128x1xi32>
    %12 = vector.shape_cast %2 : vector<128x1xf32> to vector<128x1xf32>
    %13 = vector.broadcast %12 : vector<128x1xf32> to vector<128x128xf32>
    %14 = tpu.transpose %13, [1, 0] : vector<128x128xf32> -> vector<128x128xf32>
    %15 = vector.extract_strided_slice %14 {offsets = [0, 0], sizes = [1, 128], strides = [1, 1]} : vector<128x128xf32> to vector<1x128xf32>
    %c0_2 = arith.constant 0 : index
    %c0_3 = arith.constant 0 : index
    %16 = vector.load %arg2[%c0_2, %c0_3] : memref<1x128xf32, #tpu.memory_space<vmem>>, vector<1x128xf32>
    tpu.vector_store %arg2[%c0_2, %c0_3], %15 {strides = array<i32>} : memref<1x128xf32, #tpu.memory_space<vmem>>, vector<1x128xf32>,
    %17 = vector.shape_cast %11 : vector<128x1xi32> to vector<128x1xi32>
    %18 = vector.broadcast %17 : vector<128x1xi32> to vector<128x128xi32>
    %19 = tpu.transpose %18, [1, 0] : vector<128x128xi32> -> vector<128x128xi32>
    %20 = vector.extract_strided_slice %19 {offsets = [0, 0], sizes = [1, 128], strides = [1, 1]} : vector<128x128xi32> to vector<1x128xi32>
    %c0_4 = arith.constant 0 : index
    %c0_5 = arith.constant 0 : index
    %21 = vector.load %arg3[%c0_4, %c0_5] : memref<1x128xi32, #tpu.memory_space<vmem>>, vector<1x128xi32>
    tpu.vector_store %arg3[%c0_4, %c0_5], %20 {strides = array<i32>} : memref<1x128xi32, #tpu.memory_space<vmem>>, vector<1x128xi32>,
    return
  }
  func.func @transform_0(%arg0: i32) -> (i32, i32) {
    %c0_i32 = arith.constant 0 : i32
    %c0_i32_0 = arith.constant 0 : i32
    return %arg0, %c0_i32 : i32, i32
  }
  func.func @transform_1(%arg0: i32) -> (i32, i32) {
    %c0_i32 = arith.constant 0 : i32
    %c0_i32_0 = arith.constant 0 : i32
    return %c0_i32, %arg0 : i32, i32
  }
  func.func @transform_2(%arg0: i32) -> (i32, i32) {
    %c0_i32 = arith.constant 0 : i32
    %c0_i32_0 = arith.constant 0 : i32
    return %c0_i32, %arg0 : i32, i32
  }
}

</mosaic_0001>

<bundles_post_ra>
// kernel: tpu_custom_call.1
= control target key start
LH: loop header
LB: loop body
LE: loop exit
PB: predicated region body
PF: predicated region fallthrough
CT: control target
= control target key end

     0   :  { %8 = vsyncpa [#allocation3], 0  ;;  %vm28_vm0 = vcmask 130048   ;;  %s984_s0 = inlined_call_operand.vmem [shape: f32[128,16], index: 0, kind: input, shape index: {}]   ;;  %s985_s1 = inlined_call_operand.hbm [shape: f32[1,128], index: 1, kind: output, shape index: {0}]   ;;  %s986_s2 = inlined_call_operand.hbm [shape: s32[1,128], index: 2, kind: output, shape index: {1}]  }
   0x1   :  { %v12_v0 = vld [vmem:[%s984_s0] sm:$0xff]  ;;  %v14_v1 = vld [vmem:[%s984_s0 + $0x10] sm:$0xff]  ;;  %v549_v2 = vld [vmem:[%s984_s0 + $0x8] sm:$0xff] }
   0x2   :  { %v29_v3 = vsel %vm28_vm0, %v12_v0, -inf  ;;  %v35_v4 = vsel %vm28_vm0, %v14_v1, -inf  ;;  %v556_v5 = vld [vmem:[%s984_s0 + $0x18] sm:$0xff]  ;;  %v32_v6 = vsel %vm28_vm0, %v549_v2, -inf  ;;  %v565_v8 = vld [vmem:[%s984_s0 + $0x20] sm:$0xff]  ;;  %v570_v9 = vld [vmem:[%s984_s0 + $0x28] sm:$0xff] }
   0x3   :  { %30 = vmax.xlane.f32.xlu0 %v29_v3  ;;  %36 = vmax.xlane.f32.xlu1 %v35_v4  ;;  %v38_v7 = vsel %vm28_vm0, %v556_v5, -inf }
   0x7   :  { %33 = vmax.xlane.f32.xlu0 %v32_v6  ;;  %39 = vmax.xlane.f32.xlu1 %v38_v7 }
   0x8   :  { %9 = vsyncpa [#allocation5], 0  ;;  %v41_v10 = vsel %vm28_vm0, %v565_v8, -inf  ;;  %v44_v11 = vsel %vm28_vm0, %v570_v9, -inf  ;;  %v579_v12 = vld [vmem:[%s984_s0 + $0x30] sm:$0xff]  ;;  %v584_v13 = vld [vmem:[%s984_s0 + $0x38] sm:$0xff]  ;;  %v77_v32 = vlaneseq  ;;  %vm95_vm1 = vcmp.ne.f32.partialorder %v12_v0, %v12_v0 }
   0x9   :  { %v47_v14 = vsel %vm28_vm0, %v579_v12, -inf  ;;  %v50_v15 = vsel %vm28_vm0, %v584_v13, -inf  ;;  %v593_v16 = vld [vmem:[%s984_s0 + $0x40] sm:$0xff]  ;;  %v598_v17 = vld [vmem:[%s984_s0 + $0x48] sm:$0xff]  ;;  %v607_v20 = vld [vmem:[%s984_s0 + $0x50] sm:$0xff]  ;;  %vm97_vm2 = vcmp.ne.f32.partialorder %v14_v1, %v14_v1  ;;  %vm96_vm7 = vcmp.ne.f32.partialorder %v549_v2, %v549_v2 }
   0xa   :  { %v53_v18 = vsel %vm28_vm0, %v593_v16, -inf  ;;  %v56_v19 = vsel %vm28_vm0, %v598_v17, -inf  ;;  %v612_v21 = vld [vmem:[%s984_s0 + $0x58] sm:$0xff]  ;;  %v59_v22 = vsel %vm28_vm0, %v607_v20, -inf  ;;  %v621_v24 = vld [vmem:[%s984_s0 + $0x60] sm:$0xff]  ;;  %v626_v25 = vld [vmem:[%s984_s0 + $0x68] sm:$0xff]  ;;  %vm98_vm8 = vcmp.ne.f32.partialorder %v556_v5, %v556_v5 }
   0xb   :  { %42 = vmax.xlane.f32.xlu0 %v41_v10  ;;  %45 = vmax.xlane.f32.xlu1 %v44_v11  ;;  %v62_v23 = vsel %vm28_vm0, %v612_v21, -inf  ;;  %v65_v26 = vsel %vm28_vm0, %v621_v24, -inf  ;;  %v68_v27 = vsel %vm28_vm0, %v626_v25, -inf  ;;  %v635_v28 = vld [vmem:[%s984_s0 + $0x70] sm:$0xff]  ;;  %v640_v29 = vld [vmem:[%s984_s0 + $0x78] sm:$0xff]  ;;  %v646_v33 = vand.u32 127, %v77_v32 }
   0xc   :  { %v71_v30 = vsel %vm28_vm0, %v635_v28, -inf  ;;  %v74_v31 = vsel %vm28_vm0, %v640_v29, -inf  ;;  %vm99_vm13 = vcmp.ne.f32.partialorder %v565_v8, %v565_v8  ;;  %vm100_vm14 = vcmp.ne.f32.partialorder %v570_v9, %v570_v9  ;;  %s523_s0 = smov [#allocation2]  }
   0xd   :  { %s455_s13 = sshll.u32 %s523_s0, 4  ;;  %s456_s13 = int_to_ptr.vmem [resolvable:$true] %s455_s13 }
   0xe   :  { %s479_s14 = scalar_lea.vmem %s456_s13, 16  ;;  %s483_s15 = scalar_lea.vmem %s456_s13, 32 }
   0xf   :  { %48 = vmax.xlane.f32.xlu0 %v47_v14  ;;  %51 = vmax.xlane.f32.xlu1 %v50_v15  ;;  %p480_p0 = scmp.ne.s32.totalorder %s456_s13, %s479_s14  ;;  %p484_p1 = scmp.lt.s32.totalorder %s456_s13, %s456_s13 }
  0x10   :  { %p485_p2 = scmp.lt.s32.totalorder %s483_s15, %s479_s14 }
  0x12   :  { %p486_p3 = por %p485_p2, %p484_p1 }
  0x13   :  { %54 = vmax.xlane.f32.xlu0 %v53_v18  ;;  %57 = vmax.xlane.f32.xlu1 %v56_v19 }
  0x14   :  { %p487_p4 = pnand %p486_p3, %p480_p0 }
  0x17   :  { %60 = vmax.xlane.f32.xlu0 %v59_v22  ;;  %63 = vmax.xlane.f32.xlu1 %v62_v23 }
  0x1b   :  { %66 = vmax.xlane.f32.xlu0 %v65_v26  ;;  %69 = vmax.xlane.f32.xlu1 %v68_v27 }
  0x1f   :  { %72 = vmax.xlane.f32.xlu0 %v71_v30  ;;  %75 = vmax.xlane.f32.xlu1 %v74_v31 }
  0x8c   :  { %v648_v34 = vpop.xlane.xlu0 %30  ;;  %v650_v35 = vpop.xlane.xlu1 %36 }
  0x8d   :  { %vm79_vm3 = vcmp.eq.f32.partialorder %v12_v0, %v648_v34  ;;  %vm81_vm4 = vcmp.eq.f32.partialorder %v14_v1, %v650_v35 }
  0x8e   :  { %vm111_vm5 = vmor %vm79_vm3, %vm95_vm1 }
  0x8f   :  { %v127_v36 = vsel %vm111_vm5, %v646_v33, 16  ;;  %vm113_vm6 = vmor %vm81_vm4, %vm97_vm2  ;;  %vm101_vm4 = vcmp.ne.f32.partialorder %v579_v12, %v579_v12  ;;  %vm102_vm5 = vcmp.ne.f32.partialorder %v584_v13, %v584_v13 }
  0x90   :  { %v129_v37 = vsel %vm113_vm6, %v646_v33, 16  ;;  %v658_v38 = vpop.xlane.xlu0 %33  ;;  %v662_v39 = vpop.xlane.xlu1 %39  ;;  %v665_v40 = vsel %vm28_vm0, %v127_v36, 2147483647 }
  0x91   :  { %vm80_vm9 = vcmp.eq.f32.partialorder %v549_v2, %v658_v38  ;;  %vm82_vm10 = vcmp.eq.f32.partialorder %v556_v5, %v662_v39  ;;  %v145_v41 = vshra.s32 %v665_v40, 16  ;;  %v673_v42 = vsel %vm28_vm0, %v129_v37, 2147483647 }
  0x92   :  { %vm112_vm11 = vmor %vm80_vm9, %vm96_vm7  ;;  %v175_v43 = vshra.s32 %v673_v42, 16 }
  0x93   :  { %v128_v44 = vsel %vm112_vm11, %v646_v33, 16  ;;  %vm114_vm12 = vmor %vm82_vm10, %vm98_vm8  ;;  %v679_v45 = vcvt.s32.f32 %v145_v41  ;;  %vm103_vm10 = vcmp.ne.f32.partialorder %v593_v16, %v593_v16  ;;  %vm104_vm11 = vcmp.ne.f32.partialorder %v598_v17, %v598_v17 }
  0x94   :  { %v130_v46 = vsel %vm114_vm12, %v646_v33, 16  ;;  %v682_v47 = vpop.xlane.xlu0 %42  ;;  %v686_v48 = vpop.xlane.xlu1 %45  ;;  %v688_v49 = vcvt.s32.f32 %v175_v43  ;;  %v691_v50 = vsel %vm28_vm0, %v128_v44, 2147483647 }
  0x95   :  { %vm83_vm15 = vcmp.eq.f32.partialorder %v565_v8, %v682_v47  ;;  %148 = vmin.xlane.f32.xlu0 %v679_v45  ;;  %vm84_vm1 = vcmp.eq.f32.partialorder %v570_v9, %v686_v48  ;;  %v160_v51 = vshra.s32 %v691_v50, 16  ;;  %v700_v52 = vsel %vm28_vm0, %v130_v46, 2147483647 }
  0x96   :  { %vm115_vm2 = vmor %vm83_vm15, %vm99_vm13  ;;  %v190_v53 = vshra.s32 %v700_v52, 16 }
  0x97   :  { %v131_v54 = vsel %vm115_vm2, %v646_v33, 16  ;;  %vm116_vm3 = vmor %vm84_vm1, %vm100_vm14  ;;  %v706_v55 = vcvt.s32.f32 %v160_v51  ;;  %vm105_vm1 = vcmp.ne.f32.partialorder %v607_v20, %v607_v20  ;;  %vm106_vm2 = vcmp.ne.f32.partialorder %v612_v21, %v612_v21 }
  0x98   :  { %v132_v56 = vsel %vm116_vm3, %v646_v33, 16  ;;  %v709_v57 = vpop.xlane.xlu0 %48  ;;  %v713_v58 = vpop.xlane.xlu1 %51  ;;  %v715_v59 = vcvt.s32.f32 %v190_v53  ;;  %v718_v60 = vsel %vm28_vm0, %v131_v54, 2147483647 }
  0x99   :  { %vm85_vm6 = vcmp.eq.f32.partialorder %v579_v12, %v709_v57  ;;  %178 = vmin.xlane.f32.xlu0 %v688_v49  ;;  %163 = vmin.xlane.f32.xlu1 %v706_v55  ;;  %vm86_vm7 = vcmp.eq.f32.partialorder %v584_v13, %v713_v58  ;;  %v205_v61 = vshra.s32 %v718_v60, 16  ;;  %v728_v62 = vsel %vm28_vm0, %v132_v56, 2147483647 }
  0x9a   :  { %vm117_vm8 = vmor %vm85_vm6, %vm101_vm4  ;;  %v220_v63 = vshra.s32 %v728_v62, 16 }
  0x9b   :  { %v133_v0 = vsel %vm117_vm8, %v646_v33, 16  ;;  %vm118_vm9 = vmor %vm86_vm7, %vm102_vm5  ;;  %v734_v1 = vcvt.s32.f32 %v205_v61  ;;  %vm107_vm7 = vcmp.ne.f32.partialorder %v621_v24, %v621_v24  ;;  %vm108_vm8 = vcmp.ne.f32.partialorder %v626_v25, %v626_v25 }
  0x9c   :  { %v134_v2 = vsel %vm118_vm9, %v646_v33, 16  ;;  %v737_v3 = vpop.xlane.xlu0 %54  ;;  %v741_v4 = vpop.xlane.xlu1 %57  ;;  %v743_v5 = vcvt.s32.f32 %v220_v63  ;;  %v746_v6 = vsel %vm28_vm0, %v133_v0, 2147483647 }
  0x9d   :  { %vm87_vm12 = vcmp.eq.f32.partialorder %v593_v16, %v737_v3  ;;  %193 = vmin.xlane.f32.xlu1 %v715_v59  ;;  %208 = vmin.xlane.f32.xlu0 %v734_v1  ;;  %vm88_vm13 = vcmp.eq.f32.partialorder %v598_v17, %v741_v4  ;;  %v235_v7 = vshra.s32 %v746_v6, 16  ;;  %v756_v8 = vsel %vm28_vm0, %v134_v2, 2147483647 }
  0x9e   :  { %vm119_vm14 = vmor %vm87_vm12, %vm103_vm10  ;;  %v250_v9 = vshra.s32 %v756_v8, 16 }
  0x9f   :  { %v135_v10 = vsel %vm119_vm14, %v646_v33, 16  ;;  %vm120_vm15 = vmor %vm88_vm13, %vm104_vm11  ;;  %v762_v11 = vcvt.s32.f32 %v235_v7  ;;  %vm109_vm13 = vcmp.ne.f32.partialorder %v635_v28, %v635_v28  ;;  %vm110_vm14 = vcmp.ne.f32.partialorder %v640_v29, %v640_v29 }
  0xa0   :  { %v136_v12 = vsel %vm120_vm15, %v646_v33, 16  ;;  %v765_v13 = vpop.xlane.xlu0 %60  ;;  %v769_v14 = vpop.xlane.xlu1 %63  ;;  %v771_v15 = vcvt.s32.f32 %v250_v9  ;;  %v774_v16 = vsel %vm28_vm0, %v135_v10, 2147483647  ;;  %v144_v10 = vand.u32 65535, %v665_v40 }
  0xa1   :  { %vm89_vm3 = vcmp.eq.f32.partialorder %v607_v20, %v765_v13  ;;  %223 = vmin.xlane.f32.xlu1 %v743_v5  ;;  %238 = vmin.xlane.f32.xlu0 %v762_v11  ;;  %vm90_vm4 = vcmp.eq.f32.partialorder %v612_v21, %v769_v14  ;;  %v265_v17 = vshra.s32 %v774_v16, 16  ;;  %v784_v18 = vsel %vm28_vm0, %v136_v12, 2147483647 }
  0xa2   :  { %vm121_vm5 = vmor %vm89_vm3, %vm105_vm1  ;;  %v280_v19 = vshra.s32 %v784_v18, 16  ;;  %v189_v40 = vand.u32 65535, %v700_v52  ;;  %v219_v52 = vand.u32 65535, %v728_v62  ;;  %v249_v62 = vand.u32 65535, %v756_v8 }
  0xa3   :  { %v137_v22 = vsel %vm121_vm5, %v646_v33, 16  ;;  %vm122_vm6 = vmor %vm90_vm4, %vm106_vm2  ;;  %v790_v20 = vcvt.s32.f32 %v265_v17  ;;  %v146_v17 = vcvt.s32.f32 %v144_v10  ;;  %v279_v8 = vand.u32 65535, %v784_v18 }
  0xa4   :  { %v138_v23 = vsel %vm122_vm6, %v646_v33, 16  ;;  %v793_v26 = vpop.xlane.xlu0 %66  ;;  %v797_v21 = vpop.xlane.xlu1 %69  ;;  %v799_v27 = vcvt.s32.f32 %v280_v19  ;;  %v802_v30 = vsel %vm28_vm0, %v137_v22, 2147483647  ;;  %v159_v19 = vand.u32 65535, %v691_v50 }
  0xa5   :  { %vm91_vm9 = vcmp.eq.f32.partialorder %v621_v24, %v793_v26  ;;  %253 = vmin.xlane.f32.xlu1 %v771_v15  ;;  %268 = vmin.xlane.f32.xlu0 %v790_v20  ;;  %vm92_vm10 = vcmp.eq.f32.partialorder %v626_v25, %v797_v21  ;;  %v295_v31 = vshra.s32 %v802_v30, 16  ;;  %v812_v32 = vsel %vm28_vm0, %v138_v23, 2147483647 }
  0xa6   :  { %vm123_vm11 = vmor %vm91_vm9, %vm107_vm7  ;;  %v310_v36 = vshra.s32 %v812_v32, 16  ;;  %v174_v22 = vand.u32 65535, %v673_v42  ;;  %v221_v10 = vcvt.s32.f32 %v219_v52  ;;  %v309_v18 = vand.u32 65535, %v812_v32 }
  0xa7   :  { %v139_v37 = vsel %vm123_vm11, %v646_v33, 16  ;;  %vm124_vm12 = vmor %vm92_vm10, %vm108_vm8  ;;  %v818_v24 = vcvt.s32.f32 %v295_v31 }
  0xa8   :  { %v140_v41 = vsel %vm124_vm12, %v646_v33, 16  ;;  %v821_v43 = vpop.xlane.xlu0 %72  ;;  %v825_v25 = vpop.xlane.xlu1 %75  ;;  %v827_v44 = vcvt.s32.f32 %v310_v36  ;;  %v830_v46 = vsel %vm28_vm0, %v139_v37, 2147483647  ;;  %v161_v37 = vcvt.s32.f32 %v159_v19 }
  0xa9   :  { %vm93_vm15 = vcmp.eq.f32.partialorder %v635_v28, %v821_v43  ;;  %283 = vmin.xlane.f32.xlu1 %v799_v27  ;;  %298 = vmin.xlane.f32.xlu0 %v818_v24  ;;  %vm94_vm1 = vcmp.eq.f32.partialorder %v640_v29, %v825_v25  ;;  %v325_v51 = vshra.s32 %v830_v46, 16  ;;  %v840_v53 = vsel %vm28_vm0, %v140_v41, 2147483647 }
  0xaa   :  { %vm125_vm2 = vmor %vm93_vm15, %vm109_vm13  ;;  %v340_v54 = vshra.s32 %v840_v53, 16  ;;  %v176_v41 = vcvt.s32.f32 %v174_v22  ;;  %v339_v32 = vand.u32 65535, %v840_v53 }
  0xab   :  { %v141_v56 = vsel %vm125_vm2, %v646_v33, 16  ;;  %vm126_vm3 = vmor %vm94_vm1, %vm110_vm14  ;;  %v844_v61 = vcvt.s32.f32 %v325_v51  ;;  %v204_v51 = vand.u32 65535, %v718_v60  ;;  %v234_v60 = vand.u32 65535, %v746_v6 }
  0xac   :  { %v142_v28 = vsel %vm126_vm3, %v646_v33, 16  ;;  %v848_v63 = vsel %vm28_vm0, %v141_v56, 2147483647  ;;  %v852_v29 = vcvt.s32.f32 %v340_v54  ;;  %v191_v56 = vcvt.s32.f32 %v189_v40 }
  0xad   :  { %313 = vmin.xlane.f32.xlu1 %v827_v44  ;;  %328 = vmin.xlane.f32.xlu0 %v844_v61  ;;  %v355_v0 = vshra.s32 %v848_v63, 16  ;;  %v856_v2 = vsel %vm28_vm0, %v142_v28, 2147483647  ;;  %v206_v28 = vcvt.s32.f32 %v204_v51  ;;  %v264_v6 = vand.u32 65535, %v774_v16 }
  0xae   :  { %v370_v7 = vshra.s32 %v856_v2, 16  ;;  %v294_v16 = vand.u32 65535, %v802_v30  ;;  %v281_v51 = vcvt.s32.f32 %v279_v8  ;;  %v324_v30 = vand.u32 65535, %v830_v46 }
  0xaf   :  { %v859_v9 = vcvt.s32.f32 %v355_v0  ;;  %v354_v46 = vand.u32 65535, %v848_v63  ;;  %v369_v53 = vand.u32 65535, %v856_v2 }
  0xb0   :  { %v863_v33 = vcvt.s32.f32 %v370_v7  ;;  %v326_v52 = vcvt.s32.f32 %v324_v30 }
  0xb1   :  { %343 = vmin.xlane.f32.xlu1 %v852_v29  ;;  %358 = vmin.xlane.f32.xlu0 %v859_v9 }
  0xb5   :  { %373 = vmin.xlane.f32.xlu1 %v863_v33 }
 0x11e   :  { %v867_v12 = vpop.xlane.xlu0 %148 }
 0x11f   :  { %vm150_vm0 = vcmp.eq.f32.partialorder %v679_v45, %v867_v12 }
 0x120   :  { %v151_v23 = vsel %vm150_vm0, %v146_v17, inf  ;;  %v236_v17 = vcvt.s32.f32 %v234_v60 }
 0x121   :  { %152 = vmin.xlane.f32.xlu0 %v151_v23  ;;  %v251_v23 = vcvt.s32.f32 %v249_v62 }
 0x122   :  { %v873_v31 = vpop.xlane.xlu1 %163  ;;  %v875_v36 = vpop.xlane.xlu0 %178 }
 0x123   :  { %vm165_vm4 = vcmp.eq.f32.partialorder %v706_v55, %v873_v31  ;;  %vm180_vm5 = vcmp.eq.f32.partialorder %v688_v49, %v875_v36 }
 0x124   :  { %v166_v42 = vsel %vm165_vm4, %v161_v37, inf  ;;  %v181_v45 = vsel %vm180_vm5, %v176_v41, inf  ;;  %v266_v37 = vcvt.s32.f32 %v264_v6 }
 0x125   :  { %167 = vmin.xlane.f32.xlu1 %v166_v42  ;;  %182 = vmin.xlane.f32.xlu0 %v181_v45  ;;  %v296_v42 = vcvt.s32.f32 %v294_v16 }
 0x126   :  { %v883_v50 = vpop.xlane.xlu1 %193  ;;  %v885_v54 = vpop.xlane.xlu0 %208 }
 0x127   :  { %vm195_vm6 = vcmp.eq.f32.partialorder %v715_v59, %v883_v50  ;;  %vm210_vm7 = vcmp.eq.f32.partialorder %v734_v1, %v885_v54 }
 0x128   :  { %v196_v49 = vsel %vm195_vm6, %v191_v56, inf  ;;  %v211_v55 = vsel %vm210_vm7, %v206_v28, inf  ;;  %v311_v28 = vcvt.s32.f32 %v309_v18 }
 0x129   :  { %197 = vmin.xlane.f32.xlu1 %v196_v49  ;;  %212 = vmin.xlane.f32.xlu0 %v211_v55  ;;  %v341_v55 = vcvt.s32.f32 %v339_v32 }
 0x12a   :  { %v893_v0 = vpop.xlane.xlu1 %223  ;;  %v895_v7 = vpop.xlane.xlu0 %238 }
 0x12b   :  { %vm225_vm8 = vcmp.eq.f32.partialorder %v743_v5, %v893_v0  ;;  %vm240_vm9 = vcmp.eq.f32.partialorder %v762_v11, %v895_v7 }
 0x12c   :  { %v226_v59 = vsel %vm225_vm8, %v221_v10, inf  ;;  %v241_v1 = vsel %vm240_vm9, %v236_v17, inf  ;;  %v356_v10 = vcvt.s32.f32 %v354_v46  ;;  %v371_v17 = vcvt.s32.f32 %v369_v53 }
 0x12d   :  { %227 = vmin.xlane.f32.xlu1 %v226_v59  ;;  %242 = vmin.xlane.f32.xlu0 %v241_v1  ;;  %v230_v1 = vcvt.f32.s32 %v893_v0 }
 0x12e   :  { %v903_v19 = vpop.xlane.xlu1 %253  ;;  %v905_v22 = vpop.xlane.xlu0 %268 }
 0x12f   :  { %vm255_vm10 = vcmp.eq.f32.partialorder %v771_v15, %v903_v19  ;;  %vm270_vm11 = vcmp.eq.f32.partialorder %v790_v20, %v905_v22  ;;  %v231_v16 = vshll.u32 %v230_v1, 16  ;;  %v275_v0 = vcvt.f32.s32 %v905_v22 }
 0x130   :  { %v256_v5 = vsel %vm255_vm10, %v251_v23, inf  ;;  %v271_v11 = vsel %vm270_vm11, %v266_v37, inf }
 0x131   :  { %257 = vmin.xlane.f32.xlu1 %v256_v5  ;;  %272 = vmin.xlane.f32.xlu0 %v271_v11  ;;  %v276_v46 = vshll.u32 %v275_v0, 16 }
 0x132   :  { %v913_v41 = vpop.xlane.xlu1 %283  ;;  %v915_v40 = vpop.xlane.xlu0 %298 }
 0x133   :  { %vm285_vm12 = vcmp.eq.f32.partialorder %v799_v27, %v913_v41  ;;  %vm300_vm13 = vcmp.eq.f32.partialorder %v818_v24, %v915_v40 }
 0x134   :  { %v286_v15 = vsel %vm285_vm12, %v281_v51, inf  ;;  %v301_v20 = vsel %vm300_vm13, %v296_v42, inf }
 0x135   :  { %287 = vmin.xlane.f32.xlu1 %v286_v15  ;;  %302 = vmin.xlane.f32.xlu0 %v301_v20 }
 0x136   :  { %v923_v45 = vpop.xlane.xlu1 %313  ;;  %v925_v56 = vpop.xlane.xlu0 %328 }
 0x137   :  { %vm315_vm14 = vcmp.eq.f32.partialorder %v827_v44, %v923_v45  ;;  %vm330_vm15 = vcmp.eq.f32.partialorder %v844_v61, %v925_v56  ;;  %v320_v22 = vcvt.f32.s32 %v923_v45 }
 0x138   :  { %v316_v27 = vsel %vm315_vm14, %v311_v28, inf  ;;  %v331_v24 = vsel %vm330_vm15, %v326_v52, inf }
 0x139   :  { %317 = vmin.xlane.f32.xlu1 %v316_v27  ;;  %332 = vmin.xlane.f32.xlu0 %v331_v24 }
 0x13a   :  { %v933_v60 = vpop.xlane.xlu1 %343  ;;  %v935_v49 = vpop.xlane.xlu0 %358 }
 0x13b   :  { %vm345_vm1 = vcmp.eq.f32.partialorder %v852_v29, %v933_v60  ;;  %vm360_vm2 = vcmp.eq.f32.partialorder %v859_v9, %v935_v49  ;;  %v365_v45 = vcvt.f32.s32 %v935_v49 }
 0x13c   :  { %v346_v44 = vsel %vm345_vm1, %v341_v55, inf  ;;  %v361_v61 = vsel %vm360_vm2, %v356_v10, inf }
 0x13d   :  { %347 = vmin.xlane.f32.xlu1 %v346_v44  ;;  %362 = vmin.xlane.f32.xlu0 %v361_v61 }
 0x13e   :  { %v942_v63 = vpop.xlane.xlu1 %373 }
 0x13f   :  { %vm375_vm3 = vcmp.eq.f32.partialorder %v863_v33, %v942_v63 }
 0x140   :  { %v376_v62 = vsel %vm375_vm3, %v371_v17, inf }
 0x141   :  { %377 = vmin.xlane.f32.xlu1 %v376_v62 }
 0x16a   :  { %383 = vxpose.xlu0.b32.start [1/16] (narrow) %v648_v34, 8  ;;  %v155_v34 = vcvt.f32.s32 %v867_v12  ;;  %v215_v12 = vcvt.f32.s32 %v885_v54  ;;  %v260_v54 = vcvt.f32.s32 %v903_v19  ;;  %v305_v19 = vcvt.f32.s32 %v915_v40 }
 0x16b   :  { %v350_v40 = vcvt.f32.s32 %v933_v60 }
 0x16c   :  { %v261_v20 = vshll.u32 %v260_v54, 16  ;;  %v306_v17 = vshll.u32 %v305_v19, 16 }
 0x16e   :  { %384 = vxpose.xlu0.b32.cont [2/16] (narrow) %v658_v38, 8  ;;  %v156_v38 = vshll.u32 %v155_v34, 16 }
 0x172   :  { %385 = vxpose.xlu0.b32.cont [3/16] (narrow) %v650_v35, 8 }
 0x176   :  { %386 = vxpose.xlu0.b32.cont [4/16] (narrow) %v662_v39, 8  ;;  %v170_v39 = vcvt.f32.s32 %v873_v31 }
 0x17a   :  { %387 = vxpose.xlu0.b32.cont [5/16] (narrow) %v682_v47, 8 }
 0x17e   :  { %388 = vxpose.xlu0.b32.cont [6/16] (narrow) %v686_v48, 8 }
 0x182   :  { %389 = vxpose.xlu0.b32.cont [7/16] (narrow) %v709_v57, 8 }
 0x186   :  { %390 = vxpose.xlu0.b32.cont [8/16] (narrow) %v713_v58, 8 }
 0x18a   :  { %391 = vxpose.xlu0.b32.cont [9/16] (narrow) %v737_v3, 8  ;;  %v171_v3 = vshll.u32 %v170_v39, 16 }
 0x18e   :  { %392 = vxpose.xlu0.b32.cont [10/16] (narrow) %v741_v4, 8  ;;  %v185_v4 = vcvt.f32.s32 %v875_v36  ;;  %v216_v36 = vshll.u32 %v215_v12, 16 }
 0x192   :  { %393 = vxpose.xlu0.b32.cont [11/16] (narrow) %v765_v13, 8 }
 0x196   :  { %394 = vxpose.xlu0.b32.cont [12/16] (narrow) %v769_v14, 8 }
 0x19a   :  { %395 = vxpose.xlu0.b32.cont [13/16] (narrow) %v793_v26, 8 }
 0x19e   :  { %396 = vxpose.xlu0.b32.cont [14/16] (narrow) %v797_v21, 8 }
 0x1a2   :  { %397 = vxpose.xlu0.b32.cont [15/16] (narrow) %v821_v43, 8  ;;  %v186_v43 = vshll.u32 %v185_v4, 16 }
 0x1a6   :  { %398 = vxpose.xlu0.b32.end [16/16] (narrow) %v825_v25, 8  ;;  %v200_v25 = vcvt.f32.s32 %v883_v50  ;;  %v245_v50 = vcvt.f32.s32 %v895_v7  ;;  %v290_v7 = vcvt.f32.s32 %v913_v41  ;;  %v335_v41 = vcvt.f32.s32 %v925_v56 }
 0x1a7   :  { %v366_v56 = vshll.u32 %v365_v45, 16 }
 0x1a8   :  { %v201_v33 = vshll.u32 %v200_v25, 16  ;;  %v246_v42 = vshll.u32 %v245_v50, 16  ;;  %v291_v10 = vshll.u32 %v290_v7, 16 }
 0x1aa   :  { %v153_v35 = vpop.xlane.xlu0 %152 }
 0x1ab   :  { %v154_v47 = vcvt.f32.s32 %v153_v35 }
 0x1ad   :  { %v157_v48 = vadd.s32 %v156_v38, %v154_v47  ;;  %v321_v38 = vshll.u32 %v320_v22, 16 }
 0x1ae   :  { %v168_v57 = vpop.xlane.xlu1 %167  ;;  %v183_v58 = vpop.xlane.xlu0 %182 }
 0x1af   :  { %v169_v13 = vcvt.f32.s32 %v168_v57  ;;  %416 = vxpose.xlu1.b32.start [1/16] (narrow) %v157_v48, 8  ;;  %v184_v26 = vcvt.f32.s32 %v183_v58  ;;  %v336_v57 = vshll.u32 %v335_v41, 16 }
 0x1b1   :  { %v172_v14 = vadd.s32 %v171_v3, %v169_v13  ;;  %v187_v29 = vadd.s32 %v186_v43, %v184_v26  ;;  %v351_v13 = vshll.u32 %v350_v40, 16  ;;  %v380_v43 = vcvt.f32.s32 %v942_v63 }
 0x1b2   :  { %v198_v21 = vpop.xlane.xlu1 %197  ;;  %v213_v9 = vpop.xlane.xlu0 %212 }
 0x1b3   :  { %417 = vxpose.xlu1.b32.cont [2/16] (narrow) %v172_v14, 8  ;;  %v199_v2 = vcvt.f32.s32 %v198_v21  ;;  %v214_v6 = vcvt.f32.s32 %v213_v9 }
 0x1b5   :  { %v202_v31 = vadd.s32 %v201_v33, %v199_v2  ;;  %v217_v23 = vadd.s32 %v216_v36, %v214_v6  ;;  %v381_v2 = vshll.u32 %v380_v43, 16 }
 0x1b6   :  { %v228_v59 = vpop.xlane.xlu1 %227  ;;  %v243_v8 = vpop.xlane.xlu0 %242 }
 0x1b7   :  { %418 = vxpose.xlu1.b32.cont [3/16] (narrow) %v187_v29, 8  ;;  %v229_v37 = vcvt.f32.s32 %v228_v59  ;;  %v244_v11 = vcvt.f32.s32 %v243_v8 }
 0x1b9   :  { %v232_v5 = vadd.s32 %v231_v16, %v229_v37  ;;  %v247_v18 = vadd.s32 %v246_v42, %v244_v11 }
 0x1ba   :  { %v258_v51 = vpop.xlane.xlu1 %257  ;;  %v273_v15 = vpop.xlane.xlu0 %272 }
 0x1bb   :  { %419 = vxpose.xlu1.b32.cont [4/16] (narrow) %v202_v31, 8  ;;  %v259_v30 = vcvt.f32.s32 %v258_v51  ;;  %v274_v52 = vcvt.f32.s32 %v273_v15 }
 0x1bd   :  { %v262_v28 = vadd.s32 %v261_v20, %v259_v30  ;;  %v277_v27 = vadd.s32 %v276_v46, %v274_v52 }
 0x1be   :  { %v288_v32 = vpop.xlane.xlu1 %287  ;;  %v303_v55 = vpop.xlane.xlu0 %302 }
 0x1bf   :  { %420 = vxpose.xlu1.b32.cont [5/16] (narrow) %v217_v23, 8  ;;  %v289_v24 = vcvt.f32.s32 %v288_v32  ;;  %v304_v44 = vcvt.f32.s32 %v303_v55 }
 0x1c1   :  { %v292_v53 = vadd.s32 %v291_v10, %v289_v24  ;;  %v307_v62 = vadd.s32 %v306_v17, %v304_v44 }
 0x1c2   :  { %v318_v61 = vpop.xlane.xlu1 %317  ;;  %v333_v35 = vpop.xlane.xlu0 %332 }
 0x1c3   :  { %421 = vxpose.xlu1.b32.cont [6/16] (narrow) %v232_v5, 8  ;;  %v319_v34 = vcvt.f32.s32 %v318_v61  ;;  %v334_v47 = vcvt.f32.s32 %v333_v35 }
 0x1c5   :  { %v322_v39 = vadd.s32 %v321_v38, %v319_v34  ;;  %v337_v58 = vadd.s32 %v336_v57, %v334_v47 }
 0x1c6   :  { %v348_v48 = vpop.xlane.xlu1 %347  ;;  %v363_v4 = vpop.xlane.xlu0 %362 }
 0x1c7   :  { %422 = vxpose.xlu1.b32.cont [7/16] (narrow) %v247_v18, 8  ;;  %v349_v3 = vcvt.f32.s32 %v348_v48  ;;  %v364_v26 = vcvt.f32.s32 %v363_v4 }
 0x1c9   :  { %v352_v14 = vadd.s32 %v351_v13, %v349_v3  ;;  %v367_v25 = vadd.s32 %v366_v56, %v364_v26 }
 0x1ca   :  { %v378_v21 = vpop.xlane.xlu1 %377 }
 0x1cb   :  { %423 = vxpose.xlu1.b32.cont [8/16] (narrow) %v262_v28, 8  ;;  %v379_v29 = vcvt.f32.s32 %v378_v21 }
 0x1cf   :  { %424 = vxpose.xlu1.b32.cont [9/16] (narrow) %v277_v27, 8 }
 0x1d3   :  { %425 = vxpose.xlu1.b32.cont [10/16] (narrow) %v292_v53, 8 }
 0x1d7   :  { %426 = vxpose.xlu1.b32.cont [11/16] (narrow) %v307_v62, 8 }
 0x1db   :  { %427 = vxpose.xlu1.b32.cont [12/16] (narrow) %v322_v39, 8 }
 0x1df   :  { %428 = vxpose.xlu1.b32.cont [13/16] (narrow) %v337_v58, 8 }
 0x1e3   :  { %429 = vxpose.xlu1.b32.cont [14/16] (narrow) %v352_v14, 8 }
 0x1e6   :  { %v399_v60 = vpop.trf.xlu0 }
 0x1e7   :  { %430 = vxpose.xlu1.b32.cont [15/16] (narrow) %v367_v25, 8  ;;  %415 = vst [vmem:[#allocation2] sm:$0x1] %v399_v60 }
 0x1e8   :  { %490 = shalt.err (!%p487_p4)
}
 0x1e9   :  { %458 = dma.vmem_to_hbm [thread:$0]  %s456_s13, 16, %s985_s1, [#allocation3]   ;;  %v382_v49 = vadd.s32 %v381_v2, %v379_v29 }
 0x1ea   :  { %s524_s18 = smov [#allocation4]  }
 0x1eb   :  { %431 = vxpose.xlu1.b32.end [16/16] (narrow) %v382_v49, 8  ;;  %s465_s19 = sshll.u32 %s524_s18, 4  ;;  %s466_s19 = int_to_ptr.vmem [resolvable:$true] %s465_s19 }
 0x1ec   :  { %s499_s20 = scalar_lea.vmem %s466_s19, 16  ;;  %s503_s21 = scalar_lea.vmem %s466_s19, 32 }
 0x1ed   :  { %p500_p5 = scmp.ne.s32.totalorder %s466_s19, %s499_s20  ;;  %p504_p6 = scmp.lt.s32.totalorder %s466_s19, %s466_s19 }
 0x1ee   :  { %p505_p7 = scmp.lt.s32.totalorder %s503_s21, %s499_s20 }
 0x1f0   :  { %p506_p8 = por %p505_p7, %p504_p6 }
 0x1f2   :  { %p507_p9 = pnand %p506_p8, %p500_p5 }
 0x22b   :  { %v432_v63 = vpop.trf.xlu1 }
 0x22c   :  { %448 = vst [vmem:[#allocation4] sm:$0x1] %v432_v63 }
 0x22d   :  { %510 = shalt.err (!%p507_p9)
}
 0x22e   :  { %468 = dma.vmem_to_hbm [thread:$0]  %s466_s19, 16, %s986_s2, [#allocation5]  }
 0x22f   :  { %519 = dma.done.wait [#allocation3], 16  }
 0x230   :  { %520 = vsyncadd [#allocation3], 4294967280 }
 0x231   :  { %521 = dma.done.wait [#allocation5], 16  }
 0x232   :  { %522 = vsyncadd [#allocation5], 4294967280 }
 0x233   :  { %475 = vsyncpa [#allocation3], 1 }
 0x234   :  { %476 = vsyncpa [#allocation5], 1 }

</bundles_post_ra>
